<compile_context>
chip_gen: v7x
topology: tpu7x:2x2x1
jax: 0.10.0
libtpu: 0.0.40
codegen_flags: <defaults>
</compile_context>

<pallas_src>
import functools

import jax
import jax.numpy as jnp
from jax.experimental import pallas as pl
from jax.experimental.pallas import tpu as pltpu


def _round_up(x: int, m: int) -> int:
    return (x + m - 1) // m * m


def _round_down(x: int, m: int) -> int:
    return (x // m) * m


def _vmem_limit_bytes() -> int:
    """Per-generation scoped-VMEM limit (v5e/v6e ~96 MiB, v7x ~48 MiB per TC)."""
    try:
        cap = pltpu.get_tpu_info().vmem_capacity_bytes
    except Exception:                      # older/newer jax or non-TPU trace
        cap = 64 * 1024 * 1024             # conservative: v7x per-TC VMEM
    return min(cap * 3 // 4, 96 * 1024 * 1024)


# ---------------------------------------------------------------------------
# Kernel:  out[mi] += adj[r, mi, ni] @ xw[r, ni]      (reduction over r, ni)
# ---------------------------------------------------------------------------
def _rgcn_kernel(adj_ref, xw_ref, out_ref, *, bn, n_valid, n_tiles, resident_xw):
    r = pl.program_id(1)
    ni = pl.program_id(2)

    # First step of the (r, ni) reduction for this VMEM-resident output block.
    @pl.when(jnp.logical_and(r == 0, ni == 0))
    def _init():
        out_ref[...] = jnp.zeros_like(out_ref)

    adj = adj_ref[...]                                   # (bm, bn), input dtype
    if n_valid % bn != 0:
        # Ragged N tail: out-of-bounds columns of the edge block are
        # unspecified; zero them so they cannot contaminate the reduction.
        # (Cheap VPU filler while the kernel is HBM/MXU bound.)
        col = jax.lax.broadcasted_iota(jnp.int32, adj.shape, 1)
        adj = jnp.where(col < n_valid - ni * bn, adj, jnp.zeros_like(adj))
    adj = adj.astype(jnp.bfloat16)                       # in-register cast

    if resident_xw:
        # xw_ref holds ALL (r, ni) tiles, laid out as (R * n_tiles, bn, fp);
        # it is DMA'd once (constant block index) and indexed dynamically.
        xw = xw_ref[r * n_tiles + ni]                    # (bn, fp) bf16
    else:
        xw = xw_ref[...]                                 # (bn, fp) bf16

    # bf16 operands, f32 MXU accumulation directly into the resident block.
    out_ref[...] += jnp.dot(adj, xw, preferred_element_type=jnp.float32)


def rgcn_matmul(adj, xw, *, force_streamed_xw=False):
    """out = sum_r adj[r] @ xw[r].

    adj: (R, M, N) dense per-relation adjacency (streamed as-is, no pad/cast
         pre-pass; cast to bf16 in-register inside the kernel).
    xw : (R, N, F) pre-multiplied features X @ W_r (tiny; cast/padded here).
    Returns (M, F) float32.
    """
    num_rel, m, n = adj.shape
    f = xw.shape[2]
    assert xw.shape == (num_rel, n, f)

    vmem_limit = _vmem_limit_bytes()
    fp = _round_up(f, 128)          # lane-dense output / full-width MXU pushes

    # Tiny-graph fallback: pad adj up to one minimal (8, 128) tile.  For real
    # graphs (M >= 8, N >= 128) adj is passed through UNPADDED and UNCAST.
    if n < 128:
        adj = jnp.pad(adj, ((0, 0), (0, 0), (0, 128 - n)))
    if m < 8:
        adj = jnp.pad(adj, ((0, 0), (0, 8 - m), (0, 0)))
    _, m_in, n_in = adj.shape
    adj_itemsize = jnp.dtype(adj.dtype).itemsize

    # ---- tile sizes, sized against this generation's VMEM ------------------
    bn = min(_round_down(n_in, 128), 4096)
    adj_budget = vmem_limit // 2                       # double-buffered adj
    bm = adj_budget // (2 * bn * adj_itemsize + 2 * fp * 4)
    bm = _round_down(max(8, min(2048, bm)), 8)
    bm = min(bm, _round_down(m_in, 8))
    if m_in >= 512:
        # Keep >= 2 balanced M tiles so the "parallel" M axis can split across
        # the two TensorCores on v7x.
        bm = min(bm, _round_up(pl.cdiv(m_in, 2), 8))
    m_tiles = pl.cdiv(m_in, bm)
    n_tiles = pl.cdiv(n_in, bn)

    # ---- xw: tiny; cast to bf16, pad, and lay out one (r, ni) tile per
    #      leading index so the kernel can keep it fully VMEM-resident. -------
    n_pad = n_tiles * bn
    xw_p = jnp.pad(xw.astype(jnp.bfloat16),
                   ((0, 0), (0, n_pad - n), (0, fp - f)))
    xw_p = xw_p.reshape(num_rel * n_tiles, bn, fp)
    xw_bytes = xw_p.size * 2
    resident_xw = (not force_streamed_xw) and xw_bytes <= vmem_limit // 8

    if resident_xw:
        # Single constant-index block: DMA'd once, never re-streamed per M tile.
        xw_spec = pl.BlockSpec((num_rel * n_tiles, bn, fp),
                               lambda mi, r, ni: (0, 0, 0))
    else:
        xw_spec = pl.BlockSpec((pl.Squeezed(), bn, fp),
                               lambda mi, r, ni: (r * n_tiles + ni, 0, 0))

    kernel = functools.partial(_rgcn_kernel, bn=bn, n_valid=n_in,
                               n_tiles=n_tiles, resident_xw=resident_xw)

    # TODO(synk): for genuinely sparse adjacencies, scalar-prefetch a
    # per-(r, mi, ni) occupancy table and fold it into the adj index_map
    # (repeat the previous block index for empty tiles) so both the DMA and
    # the dot are skipped; pl.when alone would only skip the compute.
    out = pl.pallas_call(
        kernel,
        out_shape=jax.ShapeDtypeStruct((m_tiles * bm, fp), jnp.float32),
        grid_spec=pltpu.PrefetchScalarGridSpec(
            num_scalar_prefetch=0,
            grid=(m_tiles, num_rel, n_tiles),
            in_specs=[
                # adj[r] tile; relation dim squeezed out of the kernel view.
                pl.BlockSpec((pl.Squeezed(), bm, bn),
                             lambda mi, r, ni: (r, mi, ni)),
                xw_spec,
            ],
            out_specs=pl.BlockSpec((bm, fp), lambda mi, r, ni: (mi, 0)),
        ),
        compiler_params=pltpu.CompilerParams(
            # M tiles independent (megacore); relation + N tiles = reduction.
            dimension_semantics=("parallel", "arbitrary", "arbitrary"),
            vmem_limit_bytes=vmem_limit,
        ),
        cost_estimate=pl.CostEstimate(
            flops=2 * num_rel * m_in * n_in * fp,
            transcendentals=0,
            bytes_accessed=(adj.size * adj_itemsize + xw_bytes
                            + m_tiles * bm * fp * 4),
        ),
    )(adj, xw_p)

    return out[:m, :f]


# ---------------------------------------------------------------------------
# RGCN_Time module (forward only), parameters built deterministically in JAX.
# ---------------------------------------------------------------------------
class RGCNTime:
    def __init__(self, input_size, output_size, num_bases, num_rel,
                 prev_size, bias=False, key=None):
        self.input_size = input_size
        self.output_size = output_size
        self.num_bases = num_bases
        self.num_rel = num_rel
        self.prev_size = prev_size

        key = jax.random.PRNGKey(0) if key is None else key
        k1, k2, k3, k4 = jax.random.split(key, 4)

        def xavier(k, shape):
            fan_in, fan_out = shape[-2], shape[-1]
            bound = jnp.sqrt(6.0 / (fan_in + fan_out))
            return jax.random.uniform(k, shape, jnp.float32, -bound, bound)

        if num_bases > 0:
            self.w_bases = xavier(k1, (num_bases, input_size, output_size))
            self.w_rel = xavier(k2, (num_rel, num_bases))
            self.weight = None
        else:
            self.weight = xavier(k3, (num_rel, input_size, output_size))
            self.w_bases = self.w_rel = None

        self.bias = jnp.zeros((output_size,), jnp.float32) if bias else None
        self.weight_prev = xavier(k4, (num_rel, prev_size, output_size))

    def __call__(self, inp, adj_list, emb_prev=None, adj_prev=None,
                 idx_prev_now=None):
        # Basis decomposition (tiny glue).
        if self.num_bases > 0:
            weight = jnp.einsum('rb,bio->rio', self.w_rel, self.w_bases)
        else:
            weight = self.weight

        # TODO(synk): when output_size >> input_size, reassociate to
        # sum_r (adj_r @ X) @ W_r (accumulate the M x F_in support in VMEM and
        # apply W_r at the end of each relation) to avoid becoming MXU-bound.
        xw = jnp.einsum('nf,rfo->rno', inp.astype(jnp.float32), weight)
        output = rgcn_matmul(adj_list, xw)

        if emb_prev is not None:
            xw_prev = jnp.einsum('nf,rfo->rno',
                                 emb_prev.astype(jnp.float32),
                                 self.weight_prev)
            output_prev = rgcn_matmul(adj_prev, xw_prev)
            # Scatter-add into selected rows (glue; matches index_add sums).
            output = output.at[idx_prev_now].add(output_prev)

        if self.bias is not None:
            output = output + self.bias[None, :]
        return output


# ---------------------------------------------------------------------------
# Pure-JAX f32 reference (mirrors the PyTorch forward) for correctness check.
# ---------------------------------------------------------------------------
def rgcn_time_ref(module, inp, adj_list, emb_prev, adj_prev, idx_prev_now):
    if module.num_bases > 0:
        weight = jnp.einsum('rb,bio->rio', module.w_rel, module.w_bases)
    else:
        weight = module.weight
    weights = weight.reshape(-1, module.output_size)
    supports = [adj_list[i] @ inp for i in range(module.num_rel)]
    tmp = jnp.concatenate(supports, axis=1)
    output = tmp @ weights
    if emb_prev is not None:
        weights_prev = module.weight_prev.reshape(-1, module.output_size)
        supports_prev = [adj_prev[i] @ emb_prev for i in range(module.num_rel)]
        tmp_prev = jnp.concatenate(supports_prev, axis=1)
        output_prev = tmp_prev @ weights_prev
        output = output.at[idx_prev_now].add(output_prev)
    if module.bias is not None:
        output = output + module.bias[None, :]
    return output


if __name__ == "__main__":
    key = jax.random.PRNGKey(0)
    k1, k2, k_in, k_adj, k_prev, k_adjp, k_mod = jax.random.split(key, 7)

    # --- Test 1: kernel on the unpadded / in-kernel-masked path -------------
    # N % 128 != 0 -> ragged tail mask; M not a tile multiple -> partial edge
    # M blocks.  Exercises both the VMEM-resident and streamed xw paths.
    R, M, N, F = 2, 300, 200, 40
    adj = jax.random.uniform(k1, (R, M, N), jnp.float32)
    xw = jax.random.normal(k2, (R, N, F), jnp.float32)
    ref = jnp.einsum('rmn,rnf->mf', adj, xw)
    scale = jnp.max(jnp.abs(ref)) + 1e-6

    out = jax.block_until_ready(rgcn_matmul(adj, xw))
    assert out.shape == (M, F)
    assert jnp.max(jnp.abs(out - ref)) <= 3e-2 * scale, "resident-xw path mismatch"

    out_s = jax.block_until_ready(rgcn_matmul(adj, xw, force_streamed_xw=True))
    assert jnp.max(jnp.abs(out_s - ref)) <= 3e-2 * scale, "streamed-xw path mismatch"

    # --- Test 2: full RGCN_Time forward (tiny, non-aligned shapes; exercises
    #     the tiny-graph pad fallback + prev-timestep scatter-add). ----------
    num_rel, num_bases = 3, 2
    input_size, output_size, prev_size = 16, 32, 8
    N_now, N_prev, M_prev = 10, 12, 5

    x = jax.random.normal(k_in, (N_now, input_size), jnp.float32)
    adj_list = jax.random.uniform(k_adj, (num_rel, N_now, N_now), jnp.float32)
    emb_prev = jax.random.normal(k_prev, (N_prev, prev_size), jnp.float32)
    adj_prev = jax.random.uniform(k_adjp, (num_rel, M_prev, N_prev), jnp.float32)
    idx_prev_now = jnp.array([0, 2, 5, 7, 9], dtype=jnp.int32)

    module = RGCNTime(input_size, output_size, num_bases, num_rel,
                      prev_size, bias=False, key=k_mod)

    out2 = module(x, adj_list, emb_prev, adj_prev, idx_prev_now)
    out2 = jax.block_until_ready(out2)
    ref2 = rgcn_time_ref(module, x, adj_list, emb_prev, adj_prev, idx_prev_now)
    assert out2.shape == (N_now, output_size)
    # bf16 operand stream inside the kernel, f32 accumulation: compare against
    # the f32 reference with bf16-appropriate tolerance.
    assert jnp.allclose(out2, ref2, atol=5e-2, rtol=5e-2), "module mismatch vs reference"

    print("KERNEL_OK")
</pallas_src>

<mosaic_0001>
module attributes {stable_mosaic.version = 11 : i64} {
  func.func @_rgcn_kernel(%arg0: i32, %arg1: i32, %arg2: i32, %arg3: memref<1x296x128xf32, #tpu.memory_space<vmem>>, %arg4: memref<4x128x128xbf16, #tpu.memory_space<vmem>>, %arg5: memref<296x128xf32, #tpu.memory_space<vmem>>) attributes {dimension_semantics = [#tpu.dimension_semantics<parallel>, #tpu.dimension_semantics<arbitrary>, #tpu.dimension_semantics<arbitrary>], iteration_bounds = array<i64: 2, 2, 2>, scalar_prefetch = 0 : i64, scratch_operands = 0 : i64, tpu.core_type = #tpu.core_type<tc>, window_params = [{transform_indices = @transform_0, window_bounds = array<i64: 1, 296, 128>}, {pipeline_mode = #tpu.pipeline_mode<synchronous>, transform_indices = @transform_1, window_bounds = array<i64: 4, 128, 128>}, {transform_indices = @transform_2, window_bounds = array<i64: 296, 128>}]} {
    %c0_i32 = arith.constant 0 : i32
    %0 = arith.cmpi eq, %arg1, %c0_i32 : i32
    %c0_i32_0 = arith.constant 0 : i32
    %1 = arith.cmpi eq, %arg2, %c0_i32_0 : i32
    %2 = arith.andi %0, %1 : i1
    %3 = arith.extui %2 : i1 to i32
    %c0_i32_1 = arith.constant 0 : i32
    %4 = arith.cmpi ne, %3, %c0_i32_1 : i32
    scf.if %4 {
      %cst_11 = arith.constant 0.000000e+00 : f32
      %24 = vector.broadcast %cst_11 : f32 to vector<296x128xf32>
      %c0_12 = arith.constant 0 : index
      %c0_13 = arith.constant 0 : index
      %25 = vector.load %arg5[%c0_12, %c0_13] : memref<296x128xf32, #tpu.memory_space<vmem>>, vector<296x128xf32>
      tpu.vector_store %arg5[%c0_12, %c0_13], %24 {strides = array<i32>} : memref<296x128xf32, #tpu.memory_space<vmem>>, vector<296x128xf32>,
    } else {
    }
    %c0 = arith.constant 0 : index
    %c0_2 = arith.constant 0 : index
    %c0_3 = arith.constant 0 : index
    %5 = vector.load %arg3[%c0, %c0_2, %c0_3] : memref<1x296x128xf32, #tpu.memory_space<vmem>>, vector<1x296x128xf32>
    %6 = vector.shape_cast %5 : vector<1x296x128xf32> to vector<296x128xf32>
    %7 = tpu.iota {dimensions = array<i32: 1>} : vector<296x128xi32>
    %c128_i32 = arith.constant 128 : i32
    %8 = arith.muli %arg2, %c128_i32 : i32
    %c200_i32 = arith.constant 200 : i32
    %9 = arith.subi %c200_i32, %8 : i32
    %10 = vector.broadcast %9 : i32 to vector<296x128xi32>
    %11 = arith.cmpi slt, %7, %10 : vector<296x128xi32>
    %cst = arith.constant 0.000000e+00 : f32
    %12 = vector.broadcast %cst : f32 to vector<296x128xf32>
    %13 = arith.select %11, %6, %12 : vector<296x128xi1>, vector<296x128xf32>
    %14 = arith.truncf %13 : vector<296x128xf32> to vector<296x128xbf16>
    %c2_i32 = arith.constant 2 : i32
    %15 = arith.muli %arg1, %c2_i32 : i32
    %16 = arith.addi %15, %arg2 : i32
    %17 = arith.index_cast %16 : i32 to index
    %c0_4 = arith.constant 0 : index
    %c0_5 = arith.constant 0 : index
    %18 = vector.load %arg4[%17, %c0_4, %c0_5] : memref<4x128x128xbf16, #tpu.memory_space<vmem>>, vector<1x128x128xbf16>
    %19 = vector.shape_cast %18 : vector<1x128x128xbf16> to vector<128x128xbf16>
    %c0_6 = arith.constant 0 : index
    %c0_7 = arith.constant 0 : index
    %20 = vector.load %arg5[%c0_6, %c0_7] : memref<296x128xf32, #tpu.memory_space<vmem>>, vector<296x128xf32>
    %cst_8 = arith.constant dense<0.000000e+00> : vector<296x128xf32>
    %21 = tpu.matmul %14, %19, %cst_8 {dimension_numbers = #tpu.dot_dimension_numbers<[1], [0], [0], [1], [0, 0, 1, 1], [], []>} : vector<296x128xbf16>, vector<128x128xbf16>, vector<296x128xf32> -> vector<296x128xf32>
    %22 = arith.addf %20, %21 : vector<296x128xf32>
    %c0_9 = arith.constant 0 : index
    %c0_10 = arith.constant 0 : index
    %23 = vector.load %arg5[%c0_9, %c0_10] : memref<296x128xf32, #tpu.memory_space<vmem>>, vector<296x128xf32>
    tpu.vector_store %arg5[%c0_9, %c0_10], %22 {strides = array<i32>} : memref<296x128xf32, #tpu.memory_space<vmem>>, vector<296x128xf32>,
    return
  }
  func.func @transform_0(%arg0: i32, %arg1: i32, %arg2: i32) -> (i32, i32, i32) {
    %c0_i32 = arith.constant 0 : i32
    return %arg1, %arg0, %arg2 : i32, i32, i32
  }
  func.func @transform_1(%arg0: i32, %arg1: i32, %arg2: i32) -> (i32, i32, i32) {
    %c0_i32 = arith.constant 0 : i32
    %c0_i32_0 = arith.constant 0 : i32
    %c0_i32_1 = arith.constant 0 : i32
    %c0_i32_2 = arith.constant 0 : i32
    return %c0_i32, %c0_i32_0, %c0_i32_1 : i32, i32, i32
  }
  func.func @transform_2(%arg0: i32, %arg1: i32, %arg2: i32) -> (i32, i32) {
    %c0_i32 = arith.constant 0 : i32
    %c0_i32_0 = arith.constant 0 : i32
    return %arg0, %c0_i32 : i32, i32
  }
}

</mosaic_0001>

<bundles_post_ra>
// kernel: tpu_custom_call.1
= control target key start
LH: loop header
LB: loop body
LE: loop exit
PB: predicated region body
PF: predicated region fallthrough
CT: control target
= control target key end

     0   :  { %s2319_s0 = inlined_call_operand.vmem [shape: f32[2,300,200], index: 0, kind: input, shape index: {}]   ;;  %s2320_s1 = inlined_call_operand.vmem [shape: bf16[4,128,128], index: 1, kind: input, shape index: {}]   ;;  %s2321_s2 = inlined_call_operand.hbm [shape: f32[592,128], index: 2, kind: output, shape index: {}]  }
   0x1   :  { %2326 = sst [smem:[#allocation12_spill]] %s2319_s0 }
   0x2   :  { %7 = vsyncpa [#allocation4], 0 }
   0x3   :  { %9 = vsyncpa [#allocation4 + $0x1], 0  ;;  %s1720_s9 = smov 0   ;;  %s1722_s10 = smov 0  }
   0x4   :  { %s1724_s11 = smov 0   ;;  %s1726_s12 = smov 0  }
   0x5   :  { %s1728_s13 = smov 0   ;;  %s1730_s14 = smov 0  }
   0x6   :  { %s1732_s15 = smov 0   ;;  %s1734_s16 = smov 0  }
   0x7   :  { %s1736_s17 = smov 0   ;;  %s1738_s18 = smov 0  }
   0x8   :  { %s1740_s19 = smov 0   ;;  %s1742_s20 = smov 0  }
   0x9 LB: > { %2327 = sst [smem:[#allocation6_spill]] %s1661_s19  ;;  %s27_s21 = sadd.s32 1, %s1653_s17  ;;  %s1665_s20 = sphi %s1742_s20, %s15_s20   ;;  %s1661_s19 = sphi %s1740_s19, %s2349_s19   ;;  %s1657_s18 = sphi %s1738_s18, %s2358_s18   ;;  %s1653_s17 = sphi %s1736_s17, %s2357_s17   ;;  %s1649_s16 = sphi %s1734_s16, %s2346_s16   ;;  %s1645_s15 = sphi %s1732_s15, %s2356_s15   ;;  %s1641_s14 = sphi %s1730_s14, %s2355_s14   ;;  %s1637_s13 = sphi %s1728_s13, %s2354_s13   ;;  %s1633_s12 = sphi %s1726_s12, %s2353_s12   ;;  %s1629_s11 = sphi %s1724_s11, %s2352_s11   ;;  %s1625_s10 = sphi %s1722_s10, %s2351_s10   ;;  %s1621_s9 = sphi %s1720_s9, %s2350_s9  }
   0xa   : > { %p28_p0 = scmp.ge.s32.totalorder %s27_s21, 2  ;;  %s30_s22 = sadd.s32 1, %s1657_s18 }
   0xb   : > { %s1092_s23 = sadd.s32 4294967295, %s1665_s20   ;;  %p52_p1 = scmp.ne.s32.totalorder %s1637_s13, %s1633_s12 }
   0xc   : > { %s2360_s21 = smov (%p28_p0, %s27_s21), 0  ;;  %s2362_s22 = smov (!%p28_p0, %s30_s22), %s1657_s18 }
   0xd   : > { %2328 = sst [smem:[#allocation7_spill]] %s2360_s21  ;;  %s1093_s24 = sadd.s32 4294967294, %s1665_s20  }
   0xe   : > { %p53_p2 = scmp.eq.s32.totalorder %s1665_s20, 0  ;;  %p32_p3 = scmp.ge.s32.totalorder %s2362_s22, 2 }
   0xf   : > { %s34_s25 = sadd.s32 1, %s1661_s19  ;;  %p102_p5 = scmp.ne.s32.totalorder %s1629_s11, %s1625_s10 }
  0x10   : > { %p1791_p4 = por %p53_p2, %p52_p1  ;;  %s2364_s22 = smov (%p32_p3, %s2362_s22), 0 }
  0x11   : > { %2330 = sst [smem:[#allocation8_spill]] %s2364_s22  ;;  %s2366_s25 = smov (!%p32_p3, %s34_s25), %s1661_s19 }
  0x12   : > { %s38_s27 = ssub.s32 %s1657_s18, %s2364_s22  ;;  %p103_p6 = scmp.eq.s32.totalorder %s1092_s23, 7 }
  0x13   : > { %p36_p7 = scmp.ge.s32.totalorder %s2366_s25, 2  ;;  %p108_p8 = scmp.ne.s32.totalorder %s1625_s10, %s1621_s9 }
  0x14   : > { %p1804_p9 = por %p103_p6, %p102_p5  ;;  %p109_p10 = scmp.eq.s32.totalorder %s1093_s24, 7 }
  0x15   : > { %s2368_s25 = smov (%p36_p7, %s2366_s25), 0  ;;  %s41_s29 = ssub.s32 %s1653_s17, %s2360_s21 }
  0x16   : > { %2332 = sst [smem:[#allocation9_spill]] %s2368_s25  ;;  %p1812_p11 = por %p109_p10, %p108_p8 }
  0x17   : > { %s39_s3 = ssub.s32 %s1661_s19, %s2368_s25  ;;  %s92_s4 = sadd.s32 1, %s1629_s11 }
  0x18   : > { %s40_s5 = sor.u32 %s39_s3, %s38_s27  ;;  %p90_p12 = scmp.eq.s32.totalorder %s39_s3, 0 }
  0x19   : > { %s42_s6 = sor.u32 %s41_s29, %s40_s5  ;;  %s45_s7 = sadd.s32 1, %s1637_s13 }
  0x1a   : > { %p43_p13 = scmp.eq.s32.totalorder %s42_s6, 0  ;;  %p1095_p0 = scmp.ge.s32.totalorder %s1665_s20, 8 }
  0x1b   : > { %s1821_s8 = scalar_select %p90_p12, %s1629_s11, %s92_s4  }
  0x1c   : > { %s1824_s23 = scalar_select %p43_p13, %s1637_s13, %s45_s7  }
  0x1d   : > { %2334 = sst [smem:[#allocation10_spill]] %s1821_s8  ;;  %128 = sbr.rel (%p1095_p0) target bundleno = 114 (0x72), region = 20 }
  0x1e   : > { %2335 = sst [smem:[#allocation11_spill]] %s1824_s23 }
  0x24   : > { %131 = sbr.rel (!%p1791_p4) target bundleno = 114 (0x72), region = 24  ;;  %s133_s24 = sand.u32 (%p1791_p4), 1, %s1637_s13  }
  0x25   : > { %s136_s27 = smul.u32 (%p1791_p4), 37, %s1661_s19  ;;  %s2336_s0 = sld [smem:[#allocation12_spill]] (%p1791_p4) }
  0x26   : > { %s1318_s29 = smul.u32 (%p1791_p4), 296, %s133_s24 }
  0x27   : > { %s137_s3 = ssub.s32 (%p1791_p4), 38, %s136_s27  ;;  %s1180_s5 = smul.u32 (%p1791_p4), 74, %s1661_s19 }
  0x28   : > { %p138_p1 = scmp.lt.s32.totalorder (%p1791_p4), %s137_s3, 37  ;;  %s1319_s6 = smul.u32 (%p1791_p4), 76, %s1657_s18 }
  0x29   : > { %s143_s4 = sadd.s32 (%p1791_p4), %s1653_s17, %s1180_s5  ;;  %s1842_s8 = scalar_lea.vmem (%p1791_p4), [#allocation2], %s1318_s29  }
  0x2a   : > { %s145_s7 = sadd.s32 (%p1791_p4), %s1319_s6, %s143_s4 }
  0x2b   : > { %s2370_s3 = smov (!%p138_p1, %s137_s3), 37  ;;  %s1099_s26 = sshll.u32 %s145_s7, 3 }
  0x2c   : > { %s1096_s25 = sshll.u32 %s2370_s3, 7  ;;  %s1840_s23 = scalar_lea.vmem %s2336_s0, %s1099_s26  }
  0x2d   : > { %p1100_p2 = scmp.eq.s32.totalorder %s1096_s25, 0 }
  0x2e   : > { %1495 = sdivrem.u32 (!%p1100_p2), %s2370_s3, 37 }
  0x2f   : > { %150 = sbr.rel (%p1100_p2) target bundleno = 114 (0x72), region = 28 }
  0x37   : > { %s1845_s24 = spop.drf %1495 }
  0x38   : > { %p1101_p3 = scmp.le.s32.totalorder %s1845_s24, 0 }
  0x39   : > { %s2337_s27 = smov (!%p1101_p3), %s1842_s8  ;;  %s2338_s5 = smov (!%p1101_p3), %s1840_s23 }
  0x3a   : > { %1031 = sbr.rel (%p1101_p3) target bundleno = 85 (0x55), region = 127  ;;  %s1854_s21 = smov (!%p1101_p3), 0  }
  0x3b   : > { %s1856_s22 = smov (!%p1101_p3), 0  }
  0x41 LB: >> { %v286_v0 = vld [vmem:[%s1673_s5] sm:$0xff]  ;;  %v288_v1 = vld [vmem:[%s1673_s5 + $0x10] sm:$0xff]  ;;  %s360_s25 = sadd.s32 1, %s1677_s21  ;;  %s280_s22 = sadd.s32 1, %s1681_s22   ;;  %s1681_s22 = sphi %s1856_s22, %s280_s22   ;;  %s1677_s21 = sphi %s1854_s21, %s2341_s21   ;;  %s1673_s5 = sphi %s2338_s5, %s2340_s5   ;;  %s1669_s27 = sphi %s2337_s27, %s2339_s27  }
  0x42   : >> { %v290_v2 = vld [vmem:[%s1673_s5 + $0x20] sm:$0xff]  ;;  %287 = vst [vmem:[%s1669_s27] sm:$0xff] %v286_v0  ;;  %289 = vst [vmem:[%s1669_s27 + $0x8] sm:$0xff] %v288_v1  ;;  %v292_v3 = vld [vmem:[%s1673_s5 + $0x30] sm:$0xff]  ;;  %p361_p4 = scmp.ge.s32.totalorder %s360_s25, %s1845_s24  ;;  %p279_p5 = scmp.ge.s32.totalorder %s280_s22, %s1845_s24 }
  0x43   : >> { %291 = vst [vmem:[%s1669_s27 + $0x10] sm:$0xff] %v290_v2  ;;  %v294_v4 = vld [vmem:[%s1673_s5 + $0x40] sm:$0xff]  ;;  %v296_v5 = vld [vmem:[%s1673_s5 + $0x50] sm:$0xff]  ;;  %293 = vst [vmem:[%s1669_s27 + $0x18] sm:$0xff] %v292_v3 }
  0x44   : >> { %295 = vst [vmem:[%s1669_s27 + $0x20] sm:$0xff] %v294_v4  ;;  %297 = vst [vmem:[%s1669_s27 + $0x28] sm:$0xff] %v296_v5  ;;  %v298_v6 = vld [vmem:[%s1673_s5 + $0x60] sm:$0xff]  ;;  %v300_v7 = vld [vmem:[%s1673_s5 + $0x70] sm:$0xff]  ;;  %s2372_s25 = smov (%p361_p4, %s360_s25), 0 }
  0x45   : >> { %v302_v8 = vld [vmem:[%s1673_s5 + $0x80] sm:$0xff]  ;;  %299 = vst [vmem:[%s1669_s27 + $0x30] sm:$0xff] %v298_v6  ;;  %301 = vst [vmem:[%s1669_s27 + $0x38] sm:$0xff] %v300_v7  ;;  %v304_v9 = vld [vmem:[%s1673_s5 + $0x90] sm:$0xff]  ;;  %s363_s29 = smul.u32 592, %s2372_s25  ;;  %s2341_s21 = smov %s2372_s25 }
  0x46   : >> { %303 = vst [vmem:[%s1669_s27 + $0x40] sm:$0xff] %v302_v8  ;;  %v306_v10 = vld [vmem:[%s1673_s5 + $0xa0] sm:$0xff]  ;;  %v308_v11 = vld [vmem:[%s1673_s5 + $0xb0] sm:$0xff]  ;;  %305 = vst [vmem:[%s1669_s27 + $0x48] sm:$0xff] %v304_v9  ;;  %s364_s4 = smul.u32 296, %s2372_s25 }
  0x47   : >> { %307 = vst [vmem:[%s1669_s27 + $0x50] sm:$0xff] %v306_v10  ;;  %309 = vst [vmem:[%s1669_s27 + $0x58] sm:$0xff] %v308_v11  ;;  %v310_v12 = vld [vmem:[%s1673_s5 + $0xc0] sm:$0xff]  ;;  %v312_v13 = vld [vmem:[%s1673_s5 + $0xd0] sm:$0xff]  ;;  %s1919_s6 = scalar_lea.vmem %s1840_s23, %s363_s29  }
  0x48   : >> { %v314_v14 = vld [vmem:[%s1673_s5 + $0xe0] sm:$0xff]  ;;  %311 = vst [vmem:[%s1669_s27 + $0x60] sm:$0xff] %v310_v12  ;;  %313 = vst [vmem:[%s1669_s27 + $0x68] sm:$0xff] %v312_v13  ;;  %v316_v15 = vld [vmem:[%s1673_s5 + $0xf0] sm:$0xff]  ;;  %s366_s7 = scalar_lea.vmem %s1842_s8, %s364_s4 [#allocation2]  }
  0x49   : >> { %315 = vst [vmem:[%s1669_s27 + $0x70] sm:$0xff] %v314_v14  ;;  %v318_v16 = vld [vmem:[%s1673_s5 + $0x100] sm:$0xff]  ;;  %v320_v17 = vld [vmem:[%s1673_s5 + $0x110] sm:$0xff]  ;;  %317 = vst [vmem:[%s1669_s27 + $0x78] sm:$0xff] %v316_v15 }
  0x4a   : >> { %319 = vst [vmem:[%s1669_s27 + $0x80] sm:$0xff] %v318_v16  ;;  %321 = vst [vmem:[%s1669_s27 + $0x88] sm:$0xff] %v320_v17  ;;  %v322_v18 = vld [vmem:[%s1673_s5 + $0x120] sm:$0xff]  ;;  %v324_v19 = vld [vmem:[%s1673_s5 + $0x130] sm:$0xff] }
  0x4b   : >> { %v326_v20 = vld [vmem:[%s1673_s5 + $0x140] sm:$0xff]  ;;  %323 = vst [vmem:[%s1669_s27 + $0x90] sm:$0xff] %v322_v18  ;;  %325 = vst [vmem:[%s1669_s27 + $0x98] sm:$0xff] %v324_v19  ;;  %v328_v21 = vld [vmem:[%s1673_s5 + $0x150] sm:$0xff] }
  0x4c   : >> { %327 = vst [vmem:[%s1669_s27 + $0xa0] sm:$0xff] %v326_v20  ;;  %v330_v22 = vld [vmem:[%s1673_s5 + $0x160] sm:$0xff]  ;;  %v332_v23 = vld [vmem:[%s1673_s5 + $0x170] sm:$0xff]  ;;  %329 = vst [vmem:[%s1669_s27 + $0xa8] sm:$0xff] %v328_v21 }
  0x4d   : >> { %331 = vst [vmem:[%s1669_s27 + $0xb0] sm:$0xff] %v330_v22  ;;  %333 = vst [vmem:[%s1669_s27 + $0xb8] sm:$0xff] %v332_v23  ;;  %v334_v24 = vld [vmem:[%s1673_s5 + $0x180] sm:$0xff]  ;;  %v336_v25 = vld [vmem:[%s1673_s5 + $0x190] sm:$0xff] }
  0x4e   : >> { %v338_v26 = vld [vmem:[%s1673_s5 + $0x1a0] sm:$0xff]  ;;  %335 = vst [vmem:[%s1669_s27 + $0xc0] sm:$0xff] %v334_v24  ;;  %337 = vst [vmem:[%s1669_s27 + $0xc8] sm:$0xff] %v336_v25  ;;  %v340_v27 = vld [vmem:[%s1673_s5 + $0x1b0] sm:$0xff]  ;;  %282 = sbr.rel (!%p279_p5) target bundleno = 65 (0x41), region = 133 }
  0x4f   : >> { %339 = vst [vmem:[%s1669_s27 + $0xd0] sm:$0xff] %v338_v26  ;;  %v342_v28 = vld [vmem:[%s1673_s5 + $0x1c0] sm:$0xff]  ;;  %v344_v29 = vld [vmem:[%s1673_s5 + $0x1d0] sm:$0xff]  ;;  %341 = vst [vmem:[%s1669_s27 + $0xd8] sm:$0xff] %v340_v27 }
  0x50   : >> { %343 = vst [vmem:[%s1669_s27 + $0xe0] sm:$0xff] %v342_v28  ;;  %345 = vst [vmem:[%s1669_s27 + $0xe8] sm:$0xff] %v344_v29  ;;  %v346_v30 = vld [vmem:[%s1673_s5 + $0x1e0] sm:$0xff]  ;;  %v348_v31 = vld [vmem:[%s1673_s5 + $0x1f0] sm:$0xff] }
  0x51   : >> { %v350_v32 = vld [vmem:[%s1673_s5 + $0x200] sm:$0xff]  ;;  %347 = vst [vmem:[%s1669_s27 + $0xf0] sm:$0xff] %v346_v30  ;;  %349 = vst [vmem:[%s1669_s27 + $0xf8] sm:$0xff] %v348_v31  ;;  %v352_v33 = vld [vmem:[%s1673_s5 + $0x210] sm:$0xff] }
  0x52   : >> { %351 = vst [vmem:[%s1669_s27 + $0x100] sm:$0xff] %v350_v32  ;;  %v354_v34 = vld [vmem:[%s1673_s5 + $0x220] sm:$0xff]  ;;  %v356_v35 = vld [vmem:[%s1673_s5 + $0x230] sm:$0xff]  ;;  %353 = vst [vmem:[%s1669_s27 + $0x108] sm:$0xff] %v352_v33 }
  0x53   : >> { %355 = vst [vmem:[%s1669_s27 + $0x110] sm:$0xff] %v354_v34  ;;  %357 = vst [vmem:[%s1669_s27 + $0x118] sm:$0xff] %v356_v35  ;;  %v358_v36 = vld [vmem:[%s1673_s5 + $0x240] sm:$0xff]  ;;  %s2340_s5 = smov %s1919_s6 }
  0x54   : >> { %359 = vst [vmem:[%s1669_s27 + $0x120] sm:$0xff] %v358_v36  ;;  %s2339_s27 = smov %s366_s7 }
  0x55 PF: > { %1497 = sdivrem.u32 %s2370_s3, 37 }
  0x56   : > { %s1102_s26 = smul.u32 592, %s1845_s24 }
  0x57   : > { %s1103_s29 = smul.u32 296, %s1845_s24 }
  0x58   : > { %s1967_s4 = scalar_lea.vmem %s1840_s23, %s1102_s26  }
  0x59   : > { %s373_s0 = scalar_lea.vmem %s1842_s8, %s1103_s29 [#allocation2]  }
  0x5e   : > { %s1498_s7 = spop.drf %1497 }
  0x5f   : > { %p1104_p6 = scmp.le.s32.totalorder %s1498_s7, 0 }
  0x60   : > { %s1683_s6 = smov (!%p1104_p6), %s373_s0   ;;  %s1687_s25 = smov (!%p1104_p6), %s1967_s4  }
  0x61   : > { %1045 = sbr.rel (%p1104_p6) target bundleno = 114 (0x72), region = 138  ;;  %s1691_s22 = smov (!%p1104_p6), 0  }
  0x62   : > { %s1695_s19 = smov (!%p1104_p6), 0  }
  0x68 LB: >> { %v383_v37 = vld [vmem:[%s1689_s25] sm:$0xff]  ;;  %s385_s3 = sadd.s32 1, %s1693_s22  ;;  %s377_s19 = sadd.s32 1, %s1697_s19   ;;  %s1697_s19 = sphi %s1695_s19, %s377_s19   ;;  %s1693_s22 = sphi %s1691_s22, %s1692_s22   ;;  %s1689_s25 = sphi %s1687_s25, %s390_s25   ;;  %s1685_s6 = sphi %s1683_s6, %s391_s6  }
  0x69   : >> { %384 = vst [vmem:[%s1685_s6] sm:$0xff] %v383_v37  ;;  %p386_p7 = scmp.ge.s32.totalorder %s385_s3, %s1498_s7  ;;  %p376_p8 = scmp.ge.s32.totalorder %s377_s19, %s1498_s7 }
  0x6b   : >> { %s2374_s3 = smov (%p386_p7, %s385_s3), 0  ;;  %379 = sbr.rel (!%p376_p8) target bundleno = 104 (0x68), region = 144 }
  0x6c   : >> { %s1105_s8 = sshll.u32 %s2374_s3, 4  ;;  %s1106_s23 = sshll.u32 %s2374_s3, 3 }
  0x6d   : >> { %s390_s25 = scalar_lea.vmem %s1967_s4, %s1105_s8   ;;  %s391_s6 = scalar_lea.vmem %s373_s0, %s1106_s23 [#allocation2]  }
  0x6e   : >> { %s1692_s22 = smov %s2374_s3  }
  0x72 PF: > { %p1107_p10 = scmp.ge.s32.totalorder %s1665_s20, 1  ;;  %p396_p12 = scmp.lt.s32.totalorder %s1665_s20, 9 }
  0x74   : > { %p397_p13 = pnand %p1107_p10, %p396_p12 }
  0x75   : > { %s403_s24 = sand.u32 (!%p397_p13), 1, %s1633_s12   ;;  %s421_s27 = sand.u32 (!%p397_p13), 1, %s1625_s10  }
  0x76   : > { %400 = sbr.rel (%p397_p13) target bundleno = 484 (0x1e4), region = 76  ;;  %p431_p0 = scmp.eq.s32.totalorder (!%p397_p13), %s1645_s15, 0 }
  0x77   : > { %s1320_s5 = smul.u32 (!%p397_p13), 296, %s403_s24  ;;  %p432_p1 = scmp.eq.s32.totalorder (!%p397_p13), %s1641_s14, 0 }
  0x78   : > { %s1321_s0 = smul.u32 (!%p397_p13), 296, %s421_s27 }
  0x79   : > { %p433_p2 = pnand (!%p397_p13), %p432_p1, %p431_p0  ;;  %s1980_s19 = scalar_lea.vmem (!%p397_p13), [#allocation2], %s1320_s5 }
  0x7a   : > { %s1982_s21 = scalar_lea.vmem (!%p397_p13), [#allocation3], %s1321_s0 }
  0x7d   : > { %436 = sbr.rel (%p433_p2) target bundleno = 145 (0x91), region = 84  ;;  %v1699_v38 = vmov (!%p433_p2), 0.0  }
  0x7e   : > { %437 = vst [vmem:[%s1982_s21] sm:$0xff] (!%p433_p2), %v1699_v38  ;;  %438 = vst [vmem:[%s1982_s21 + $0x8] sm:$0xff] (!%p433_p2), %v1699_v38 }
  0x7f   : > { %439 = vst [vmem:[%s1982_s21 + $0x10] sm:$0xff] (!%p433_p2), %v1699_v38  ;;  %440 = vst [vmem:[%s1982_s21 + $0x18] sm:$0xff] (!%p433_p2), %v1699_v38 }
  0x80   : > { %441 = vst [vmem:[%s1982_s21 + $0x20] sm:$0xff] (!%p433_p2), %v1699_v38  ;;  %442 = vst [vmem:[%s1982_s21 + $0x28] sm:$0xff] (!%p433_p2), %v1699_v38 }
  0x81   : > { %443 = vst [vmem:[%s1982_s21 + $0x30] sm:$0xff] (!%p433_p2), %v1699_v38  ;;  %444 = vst [vmem:[%s1982_s21 + $0x38] sm:$0xff] (!%p433_p2), %v1699_v38 }
  0x82   : > { %445 = vst [vmem:[%s1982_s21 + $0x40] sm:$0xff] (!%p433_p2), %v1699_v38  ;;  %446 = vst [vmem:[%s1982_s21 + $0x48] sm:$0xff] (!%p433_p2), %v1699_v38 }
  0x83   : > { %447 = vst [vmem:[%s1982_s21 + $0x50] sm:$0xff] (!%p433_p2), %v1699_v38  ;;  %448 = vst [vmem:[%s1982_s21 + $0x58] sm:$0xff] (!%p433_p2), %v1699_v38 }
  0x84   : > { %449 = vst [vmem:[%s1982_s21 + $0x60] sm:$0xff] %v1699_v38  ;;  %450 = vst [vmem:[%s1982_s21 + $0x68] sm:$0xff] %v1699_v38 }
  0x85   : > { %451 = vst [vmem:[%s1982_s21 + $0x70] sm:$0xff] %v1699_v38  ;;  %452 = vst [vmem:[%s1982_s21 + $0x78] sm:$0xff] %v1699_v38 }
  0x86   : > { %453 = vst [vmem:[%s1982_s21 + $0x80] sm:$0xff] %v1699_v38  ;;  %454 = vst [vmem:[%s1982_s21 + $0x88] sm:$0xff] %v1699_v38 }
  0x87   : > { %455 = vst [vmem:[%s1982_s21 + $0x90] sm:$0xff] %v1699_v38  ;;  %456 = vst [vmem:[%s1982_s21 + $0x98] sm:$0xff] %v1699_v38 }
  0x88   : > { %457 = vst [vmem:[%s1982_s21 + $0xa0] sm:$0xff] %v1699_v38  ;;  %458 = vst [vmem:[%s1982_s21 + $0xa8] sm:$0xff] %v1699_v38 }
  0x89   : > { %459 = vst [vmem:[%s1982_s21 + $0xb0] sm:$0xff] %v1699_v38  ;;  %460 = vst [vmem:[%s1982_s21 + $0xb8] sm:$0xff] %v1699_v38 }
  0x8a   : > { %461 = vst [vmem:[%s1982_s21 + $0xc0] sm:$0xff] %v1699_v38  ;;  %462 = vst [vmem:[%s1982_s21 + $0xc8] sm:$0xff] %v1699_v38 }
  0x8b   : > { %463 = vst [vmem:[%s1982_s21 + $0xd0] sm:$0xff] %v1699_v38  ;;  %464 = vst [vmem:[%s1982_s21 + $0xd8] sm:$0xff] %v1699_v38 }
  0x8c   : > { %465 = vst [vmem:[%s1982_s21 + $0xe0] sm:$0xff] %v1699_v38  ;;  %466 = vst [vmem:[%s1982_s21 + $0xe8] sm:$0xff] %v1699_v38 }
  0x8d   : > { %467 = vst [vmem:[%s1982_s21 + $0xf0] sm:$0xff] %v1699_v38  ;;  %468 = vst [vmem:[%s1982_s21 + $0xf8] sm:$0xff] %v1699_v38 }
  0x8e   : > { %469 = vst [vmem:[%s1982_s21 + $0x100] sm:$0xff] %v1699_v38  ;;  %470 = vst [vmem:[%s1982_s21 + $0x108] sm:$0xff] %v1699_v38 }
  0x8f   : > { %471 = vst [vmem:[%s1982_s21 + $0x110] sm:$0xff] %v1699_v38  ;;  %472 = vst [vmem:[%s1982_s21 + $0x118] sm:$0xff] %v1699_v38 }
  0x90   : > { %473 = vst [vmem:[%s1982_s21 + $0x120] sm:$0xff] %v1699_v38 }
  0x91 PF: > { %s1109_s12 = sshll.u32 %s1645_s15, 1  ;;  %v1700_v39 = vmov 0.0   ;;  %vm1701_vm0 = vmmov 0   ;;  %s1108_s15 = sshll.u32 %s1641_s14, 7  ;;  %v511_v46 = vlaneseq  ;;  %v474_v50 = vld [vmem:[%s1980_s19] sm:$0xff]  ;;  %v475_v51 = vld [vmem:[%s1980_s19 + $0x8] sm:$0xff] }
  0x92   : > { %1210 = vmatprep.subr.bf16.mxu0 %v1700_v39  ;;  %s574_s26 = sadd.s32 %s1641_s14, %s1109_s12  ;;  %1302 = vmatprep.subr.bf16.mxu1 %v1700_v39  ;;  %s514_s25 = ssub.s32 200, %s1108_s15  ;;  %v494_v53 = vld [vmem:[%s1980_s19 + $0xa0] sm:$0xff]  ;;  %v495_v54 = vld [vmem:[%s1980_s19 + $0xa8] sm:$0xff]  ;;  %v1121_v55 = vpack.c.bf16 %v475_v51, %v474_v50  ;;  %v476_v58 = vld [vmem:[%s1980_s19 + $0x10] sm:$0xff] }
  0x93   : > { %s1181_s29 = sshll.u32 %s574_s26, 6  ;;  %1226 = vmatprep.mubr.msk.bf16.mxu0 %vm1701_vm0, %v1700_v39  ;;  %1266 = vmatprep.mubr.msk.bf16.mxu1 %vm1701_vm0, %v1700_v39  ;;  %v512_v48 = vand.u32 127, %v511_v46  ;;  %v515_v49 = vstv %s514_s25  ;;  %v1151_v56 = vpack.c.bf16 %v495_v54, %v494_v53  ;;  %v477_v59 = vld [vmem:[%s1980_s19 + $0x18] sm:$0xff]  ;;  %v496_v60 = vld [vmem:[%s1980_s19 + $0xb0] sm:$0xff]  ;;  %v478_v0 = vld [vmem:[%s1980_s19 + $0x20] sm:$0xff]  ;;  %s1182_s14 = smul.u32 4736, %s1649_s16 }
  0x94   : > { %s2032_s6 = scalar_lea.vmem %s2320_s1, %s1181_s29  ;;  %v497_v61 = vld [vmem:[%s1980_s19 + $0xb8] sm:$0xff]  ;;  %v1124_v62 = vpack.c.bf16 %v477_v59, %v476_v58  ;;  %v479_v1 = vld [vmem:[%s1980_s19 + $0x28] sm:$0xff]  ;;  %v498_v2 = vld [vmem:[%s1980_s19 + $0xc0] sm:$0xff]  ;;  %s951_s22 = sshll.u32 %s1982_s21, 4  ;;  %s2249_s22 = int_to_ptr.vmem [resolvable:$true] %s951_s22 }
  0x95   : > { %v1499_v40 = vld [vmem:[%s2032_s6] sm:$0xff]   ;;  %v1500_v41 = vld [vmem:[%s2032_s6 + $0x8] sm:$0xff]   ;;  %v1501_v42 = vld [vmem:[%s2032_s6 + $0x10] sm:$0xff]   ;;  %vm516_vm1 = vcmp.lt.s32.totalorder %v512_v48, %v515_v49  ;;  %v1154_v63 = vpack.c.bf16 %v497_v61, %v496_v60  ;;  %v1127_v4 = vpack.c.bf16 %v479_v1, %v478_v0  ;;  %s2247_s23 = scalar_lea.hbm %s2321_s2, %s1182_s14  ;;  %s2255_s16 = scalar_lea.sflag [#allocation4], %s421_s27 }
  0x96   : > { %1211 = vmatpush3.bf16.msra.mxu0 %v1499_v40  ;;  %1310 = vmatpush3.bf16.msra.mxu1 %v1499_v40  ;;  %v1502_v43 = vld [vmem:[%s2032_s6 + $0x18] sm:$0xff]   ;;  %v1503_v44 = vld [vmem:[%s2032_s6 + $0x20] sm:$0xff]   ;;  %v1504_v45 = vld [vmem:[%s2032_s6 + $0x28] sm:$0xff]   ;;  %s1507_s24 = scalar_lea.vmem %s2249_s22, 4736  ;;  %s1702_s5 = smov [#allocation3]  }
  0x97   : > { %1212 = vmatprep.subr.bf16.mxu0 %v1700_v39  ;;  %1303 = vmatprep.subr.bf16.mxu1 %v1700_v39  ;;  %v1505_v47 = vld [vmem:[%s2032_s6 + $0x30] sm:$0xff]   ;;  %v1506_v52 = vld [vmem:[%s2032_s6 + $0x38] sm:$0xff]   ;;  %vm2061_vm2 = vmpackc.low %vm516_vm1, %vm516_vm1  ;;  %p1508_p3 = scmp.ne.s32.totalorder %s2249_s22, %s1507_s24  ;;  %s1511_s0 = sshll.u32 %s1702_s5, 4  ;;  %s1512_s0 = int_to_ptr.vmem [resolvable:$false] %s1511_s0 }
  0x98   : > { %v499_v3 = vld [vmem:[%s1980_s19 + $0xc8] sm:$0xff]  ;;  %v480_v6 = vld [vmem:[%s1980_s19 + $0x30] sm:$0xff]  ;;  %v481_v7 = vld [vmem:[%s1980_s19 + $0x38] sm:$0xff]  ;;  %p1514_p6 = scmp.lt.s32.totalorder %s2249_s22, %s1512_s0 }
  0x99   : > { %v1157_v5 = vpack.c.bf16 %v499_v3, %v498_v2  ;;  %v500_v8 = vld [vmem:[%s1980_s19 + $0xd0] sm:$0xff]  ;;  %v501_v9 = vld [vmem:[%s1980_s19 + $0xd8] sm:$0xff]  ;;  %v1130_v10 = vpack.c.bf16 %v481_v7, %v480_v6  ;;  %v482_v12 = vld [vmem:[%s1980_s19 + $0x40] sm:$0xff]  ;;  %p1509_p4 = pnand %p1508_p3, %p1804_p9 }
  0x9a   : > { %1213 = vmatpush3.bf16.msra.mxu0 %v1500_v41  ;;  %1311 = vmatpush3.bf16.msra.mxu1 %v1500_v41  ;;  %v1160_v11 = vpack.c.bf16 %v501_v9, %v500_v8  ;;  %v483_v13 = vld [vmem:[%s1980_s19 + $0x48] sm:$0xff]  ;;  %v502_v14 = vld [vmem:[%s1980_s19 + $0xe0] sm:$0xff]  ;;  %v484_v18 = vld [vmem:[%s1980_s19 + $0x50] sm:$0xff] }
  0x9b   : > { %1214 = vmatprep.subr.bf16.mxu0 %v1700_v39  ;;  %1304 = vmatprep.subr.bf16.mxu1 %v1700_v39  ;;  %v503_v15 = vld [vmem:[%s1980_s19 + $0xe8] sm:$0xff]  ;;  %v1133_v16 = vpack.c.bf16 %v483_v13, %v482_v12  ;;  %v485_v19 = vld [vmem:[%s1980_s19 + $0x58] sm:$0xff]  ;;  %v504_v20 = vld [vmem:[%s1980_s19 + $0xf0] sm:$0xff]  ;;  %p1510_p5 = pneg %p1509_p4 }
  0x9c   : > { %v1163_v17 = vpack.c.bf16 %v503_v15, %v502_v14  ;;  %v505_v21 = vld [vmem:[%s1980_s19 + $0xf8] sm:$0xff]  ;;  %v1136_v22 = vpack.c.bf16 %v485_v19, %v484_v18  ;;  %v486_v24 = vld [vmem:[%s1980_s19 + $0x60] sm:$0xff]  ;;  %v487_v25 = vld [vmem:[%s1980_s19 + $0x68] sm:$0xff] }
  0x9d   : > { %v1166_v23 = vpack.c.bf16 %v505_v21, %v504_v20  ;;  %v506_v26 = vld [vmem:[%s1980_s19 + $0x100] sm:$0xff]  ;;  %v507_v27 = vld [vmem:[%s1980_s19 + $0x108] sm:$0xff]  ;;  %v1139_v28 = vpack.c.bf16 %v487_v25, %v486_v24  ;;  %v488_v30 = vld [vmem:[%s1980_s19 + $0x70] sm:$0xff] }
  0x9e   : > { %1215 = vmatpush3.bf16.msra.mxu0 %v1501_v42  ;;  %1312 = vmatpush3.bf16.msra.mxu1 %v1501_v42  ;;  %v1169_v29 = vpack.c.bf16 %v507_v27, %v506_v26  ;;  %v489_v31 = vld [vmem:[%s1980_s19 + $0x78] sm:$0xff]  ;;  %v508_v32 = vld [vmem:[%s1980_s19 + $0x110] sm:$0xff]  ;;  %v490_v36 = vld [vmem:[%s1980_s19 + $0x80] sm:$0xff] }
  0x9f   : > { %1216 = vmatprep.subr.bf16.mxu0 %v1700_v39  ;;  %1305 = vmatprep.subr.bf16.mxu1 %v1700_v39  ;;  %v509_v33 = vld [vmem:[%s1980_s19 + $0x118] sm:$0xff]  ;;  %v1142_v34 = vpack.c.bf16 %v489_v31, %v488_v30  ;;  %v491_v37 = vld [vmem:[%s1980_s19 + $0x88] sm:$0xff]  ;;  %v510_v38 = vld [vmem:[%s1980_s19 + $0x120] sm:$0xff] }
  0xa0   : > { %v1172_v35 = vpack.c.bf16 %v509_v33, %v508_v32  ;;  %v1145_v40 = vpack.c.bf16 %v491_v37, %v490_v36  ;;  %v1175_v41 = vpack.c.bf16 %v510_v38, %v510_v38  ;;  %v492_v42 = vld [vmem:[%s1980_s19 + $0x90] sm:$0xff]  ;;  %v595_v48 = vld [vmem:[%s1982_s21 + $0x8] sm:$0xff]  ;;  %v596_v60 = vld [vmem:[%s1982_s21 + $0x10] sm:$0xff] }
  0xa1   : > { %v614_v46 = vld [vmem:[%s1982_s21 + $0xa0] sm:$0xff]  ;;  %v615_v50 = vld [vmem:[%s1982_s21 + $0xa8] sm:$0xff]  ;;  %v616_v61 = vld [vmem:[%s1982_s21 + $0xb0] sm:$0xff] }
  0xa2   : > { %1217 = vmatpush3.bf16.msra.mxu0 %v1502_v43  ;;  %1313 = vmatpush3.bf16.msra.mxu1 %v1502_v43  ;;  %v493_v43 = vld [vmem:[%s1980_s19 + $0x98] sm:$0xff]  ;;  %v617_v1 = vld [vmem:[%s1982_s21 + $0xb8] sm:$0xff]  ;;  %v598_v12 = vld [vmem:[%s1982_s21 + $0x20] sm:$0xff]  ;;  %s1513_s19 = scalar_lea.vmem %s1512_s0, 9472 }
  0xa3   : > { %1218 = vmatprep.subr.bf16.mxu0 %v1700_v39  ;;  %1306 = vmatprep.subr.bf16.mxu1 %v1700_v39  ;;  %v618_v13 = vld [vmem:[%s1982_s21 + $0xc0] sm:$0xff]  ;;  %v599_v15 = vld [vmem:[%s1982_s21 + $0x28] sm:$0xff]  ;;  %v601_v31 = vld [vmem:[%s1982_s21 + $0x38] sm:$0xff]  ;;  %p1515_p7 = scmp.lt.s32.totalorder %s1513_s19, %s1507_s24 }
  0xa4   : > { %v621_v33 = vld [vmem:[%s1982_s21 + $0xd8] sm:$0xff] }
  0xa5   : > { %p1516_p8 = por %p1515_p7, %p1514_p6 }
  0xa6   : > { %1219 = vmatpush3.bf16.msra.mxu0 %v1503_v44  ;;  %1314 = vmatpush3.bf16.msra.mxu1 %v1503_v44  ;;  %v1148_v44 = vpack.c.bf16 %v493_v43, %v492_v42 }
  0xa7   : > { %1220 = vmatprep.subr.bf16.mxu0 %v1700_v39  ;;  %1307 = vmatprep.subr.bf16.mxu1 %v1700_v39  ;;  %p1517_p10 = pnand %p1516_p8, %p1510_p5 }
  0xaa   : > { %1221 = vmatpush3.bf16.msra.mxu0 %v1504_v45  ;;  %1315 = vmatpush3.bf16.msra.mxu1 %v1504_v45  ;;  %v594_v45 = vld [vmem:[%s1982_s21] sm:$0xff] }
  0xab   : > { %1222 = vmatprep.subr.bf16.mxu0 %v1700_v39  ;;  %1308 = vmatprep.subr.bf16.mxu1 %v1700_v39 }
  0xae   : > { %1223 = vmatpush3.bf16.msra.mxu0 %v1505_v47  ;;  %1316 = vmatpush3.bf16.msra.mxu1 %v1505_v47 }
  0xaf   : > { %1224 = vmatprep.subr.bf16.mxu0 %v1700_v39  ;;  %1309 = vmatprep.subr.bf16.mxu1 %v1700_v39 }
  0xb2   : > { %1225 = vmatpush3.bf16.msra.mxu0 %v1506_v52  ;;  %1317 = vmatpush3.bf16.msra.mxu1 %v1506_v52 }
  0xb5   : > { %1227 = vmatmul.mubr.msk.bf16.vlgmr.msra.gmra.mrb[0].mxu0 %vm2061_vm2, %v1121_v55  ;;  %1267 = vmatmul.mubr.msk.bf16.vlgmr.msra.gmra.mrb[0].mxu1 %vm2061_vm2, %v1151_v56 }
  0xb6   : > { %1230 = vmatprep.mubr.msk.bf16.mxu0 %vm1701_vm0, %v1700_v39  ;;  %1270 = vmatprep.mubr.msk.bf16.mxu1 %vm1701_vm0, %v1700_v39 }
  0xbd   : > { %1231 = vmatmul.mubr.msk.bf16.gmra.mrb[4].mxu0 %vm2061_vm2, %v1124_v62  ;;  %1271 = vmatmul.mubr.msk.bf16.gmra.mrb[4].mxu1 %vm2061_vm2, %v1154_v63  ;;  %v597_v63 = vld [vmem:[%s1982_s21 + $0x18] sm:$0xff] }
  0xbe   : > { %1234 = vmatprep.mubr.msk.bf16.mxu0 %vm1701_vm0, %v1700_v39  ;;  %1274 = vmatprep.mubr.msk.bf16.mxu1 %vm1701_vm0, %v1700_v39 }
  0xc5   : > { %1235 = vmatmul.mubr.msk.bf16.gmra.mrb[8].mxu0 %vm2061_vm2, %v1127_v4  ;;  %1275 = vmatmul.mubr.msk.bf16.gmra.mrb[8].mxu1 %vm2061_vm2, %v1157_v5 }
  0xc6   : > { %1238 = vmatprep.mubr.msk.bf16.mxu0 %vm1701_vm0, %v1700_v39  ;;  %1278 = vmatprep.mubr.msk.bf16.mxu1 %vm1701_vm0, %v1700_v39 }
  0xcd   : > { %1239 = vmatmul.mubr.msk.bf16.gmra.mrb[12].mxu0 %vm2061_vm2, %v1130_v10  ;;  %1279 = vmatmul.mubr.msk.bf16.gmra.mrb[12].mxu1 %vm2061_vm2, %v1160_v11 }
  0xce   : > { %1242 = vmatprep.mubr.msk.bf16.mxu0 %vm1701_vm0, %v1700_v39  ;;  %1282 = vmatprep.mubr.msk.bf16.mxu1 %vm1701_vm0, %v1700_v39 }
  0xd5   : > { %1243 = vmatmul.mubr.msk.bf16.gmra.mrb[16].mxu0 %vm2061_vm2, %v1133_v16  ;;  %1283 = vmatmul.mubr.msk.bf16.gmra.mrb[16].mxu1 %vm2061_vm2, %v1163_v17  ;;  %v619_v17 = vld [vmem:[%s1982_s21 + $0xc8] sm:$0xff] }
  0xd6   : > { %1246 = vmatprep.mubr.msk.bf16.mxu0 %vm1701_vm0, %v1700_v39  ;;  %1286 = vmatprep.mubr.msk.bf16.mxu1 %vm1701_vm0, %v1700_v39 }
  0xdd   : > { %1247 = vmatmul.mubr.msk.bf16.gmra.mrb[20].mxu0 %vm2061_vm2, %v1136_v22  ;;  %1287 = vmatmul.mubr.msk.bf16.gmra.mrb[20].mxu1 %vm2061_vm2, %v1166_v23 }
  0xde   : > { %1250 = vmatprep.mubr.msk.bf16.mxu0 %vm1701_vm0, %v1700_v39  ;;  %1290 = vmatprep.mubr.msk.bf16.mxu1 %vm1701_vm0, %v1700_v39 }
  0xe5   : > { %1251 = vmatmul.mubr.msk.bf16.gmra.mrb[24].mxu0 %vm2061_vm2, %v1139_v28  ;;  %1291 = vmatmul.mubr.msk.bf16.gmra.mrb[24].mxu1 %vm2061_vm2, %v1169_v29  ;;  %v600_v28 = vld [vmem:[%s1982_s21 + $0x30] sm:$0xff] }
  0xe6   : > { %1254 = vmatprep.mubr.msk.bf16.mxu0 %vm1701_vm0, %v1700_v39  ;;  %1294 = vmatprep.mubr.msk.bf16.mxu1 %vm1701_vm0, %v1700_v39  ;;  %v620_v29 = vld [vmem:[%s1982_s21 + $0xd0] sm:$0xff] }
  0xed   : > { %1255 = vmatmul.mubr.msk.bf16.gmra.mrb[28].mxu0 %vm2061_vm2, %v1142_v34  ;;  %1295 = vmatmul.mubr.msk.bf16.gmra.mrb[28].mxu1 %vm2061_vm2, %v1172_v35 }
  0xee   : > { %1258 = vmatprep.mubr.msk.bf16.mxu0 %vm1701_vm0, %v1700_v39  ;;  %1298 = vmatprep.mubr.msk.bf16.mxu1 %vm1701_vm0, %v1700_v39 }
  0xf5   : > { %1259 = vmatmul.mubr.msk.bf16.gmra.mrb[32].mxu0 %vm2061_vm2, %v1145_v40  ;;  %1299 = vmatmul.mubr.msk.bf16.gmra.mrb[32].mxu1 %vm2061_vm2, %v1175_v41 }
  0xf6   : > { %1262 = vmatprep.mubr.msk.bf16.mxu0 %vm1701_vm0, %v1700_v39 }
  0xfd   : > { %1263 = vmatmul.mubr.msk.bf16.gmra.mrb[36].mxu0 %vm2061_vm2, %v1148_v44 }
 0x188   : > { %v713_v47 = vpop.f32.mrb[0].mxu0  ;;  %v793_v49 = vpop.f32.mrb[0].mxu1 }
 0x189   : > { %v863_v51 = vadd.f32 %v713_v47, %v594_v45  ;;  %v1228_v39 = vpop.f32.mrb[1].mxu0  ;;  %v883_v52 = vadd.f32 %v793_v49, %v614_v46  ;;  %v1268_v53 = vpop.f32.mrb[1].mxu1  ;;  %v602_v45 = vld [vmem:[%s1982_s21 + $0x40] sm:$0xff] }
 0x18a   : > { %v716_v54 = vpop.f32.mrb[2].mxu0  ;;  %v796_v55 = vpop.f32.mrb[2].mxu1  ;;  %v622_v46 = vld [vmem:[%s1982_s21 + $0xe0] sm:$0xff] }
 0x18b   : > { %900 = vst [vmem:[%s1982_s21] sm:$0xff] %v863_v51  ;;  %v864_v56 = vadd.f32 %v716_v54, %v595_v48  ;;  %v1229_v57 = vpop.f32.mrb[3].mxu0  ;;  %920 = vst [vmem:[%s1982_s21 + $0xa0] sm:$0xff] %v883_v52  ;;  %v884_v58 = vadd.f32 %v796_v55, %v615_v50  ;;  %v1269_v59 = vpop.f32.mrb[3].mxu1  ;;  %v603_v48 = vld [vmem:[%s1982_s21 + $0x48] sm:$0xff] }
 0x18c   : > { %v623_v50 = vld [vmem:[%s1982_s21 + $0xe8] sm:$0xff] }
 0x18d   : > { %901 = vst [vmem:[%s1982_s21 + $0x8] sm:$0xff] %v864_v56  ;;  %921 = vst [vmem:[%s1982_s21 + $0xa8] sm:$0xff] %v884_v58 }
 0x190   : > { %v721_v62 = vpop.f32.mrb[4].mxu0  ;;  %v801_v0 = vpop.f32.mrb[4].mxu1 }
 0x191   : > { %v865_v2 = vadd.f32 %v721_v62, %v596_v60  ;;  %v1232_v3 = vpop.f32.mrb[5].mxu0  ;;  %v885_v4 = vadd.f32 %v801_v0, %v616_v61  ;;  %v1272_v5 = vpop.f32.mrb[5].mxu1  ;;  %v604_v60 = vld [vmem:[%s1982_s21 + $0x50] sm:$0xff] }
 0x192   : > { %v724_v6 = vpop.f32.mrb[6].mxu0  ;;  %v804_v7 = vpop.f32.mrb[6].mxu1  ;;  %v624_v61 = vld [vmem:[%s1982_s21 + $0xf0] sm:$0xff] }
 0x193   : > { %902 = vst [vmem:[%s1982_s21 + $0x10] sm:$0xff] %v865_v2  ;;  %v866_v8 = vadd.f32 %v724_v6, %v597_v63  ;;  %v1233_v9 = vpop.f32.mrb[7].mxu0  ;;  %922 = vst [vmem:[%s1982_s21 + $0xb0] sm:$0xff] %v885_v4  ;;  %v886_v10 = vadd.f32 %v804_v7, %v617_v1  ;;  %v1273_v11 = vpop.f32.mrb[7].mxu1  ;;  %v605_v63 = vld [vmem:[%s1982_s21 + $0x58] sm:$0xff] }
 0x194   : > { %v625_v1 = vld [vmem:[%s1982_s21 + $0xf8] sm:$0xff] }
 0x195   : > { %903 = vst [vmem:[%s1982_s21 + $0x18] sm:$0xff] %v866_v8  ;;  %923 = vst [vmem:[%s1982_s21 + $0xb8] sm:$0xff] %v886_v10 }
 0x198   : > { %v729_v14 = vpop.f32.mrb[8].mxu0  ;;  %v809_v16 = vpop.f32.mrb[8].mxu1 }
 0x199   : > { %v867_v18 = vadd.f32 %v729_v14, %v598_v12  ;;  %v1236_v19 = vpop.f32.mrb[9].mxu0  ;;  %v887_v20 = vadd.f32 %v809_v16, %v618_v13  ;;  %v1276_v21 = vpop.f32.mrb[9].mxu1  ;;  %v606_v12 = vld [vmem:[%s1982_s21 + $0x60] sm:$0xff] }
 0x19a   : > { %v732_v22 = vpop.f32.mrb[10].mxu0  ;;  %v812_v23 = vpop.f32.mrb[10].mxu1  ;;  %v626_v13 = vld [vmem:[%s1982_s21 + $0x100] sm:$0xff] }
 0x19b   : > { %904 = vst [vmem:[%s1982_s21 + $0x20] sm:$0xff] %v867_v18  ;;  %v868_v24 = vadd.f32 %v732_v22, %v599_v15  ;;  %v1237_v25 = vpop.f32.mrb[11].mxu0  ;;  %924 = vst [vmem:[%s1982_s21 + $0xc0] sm:$0xff] %v887_v20  ;;  %v888_v26 = vadd.f32 %v812_v23, %v619_v17  ;;  %v1277_v27 = vpop.f32.mrb[11].mxu1  ;;  %v607_v15 = vld [vmem:[%s1982_s21 + $0x68] sm:$0xff] }
 0x19c   : > { %v627_v17 = vld [vmem:[%s1982_s21 + $0x108] sm:$0xff] }
 0x19d   : > { %905 = vst [vmem:[%s1982_s21 + $0x28] sm:$0xff] %v868_v24  ;;  %925 = vst [vmem:[%s1982_s21 + $0xc8] sm:$0xff] %v888_v26 }
 0x1a0   : > { %v737_v30 = vpop.f32.mrb[12].mxu0  ;;  %v817_v32 = vpop.f32.mrb[12].mxu1 }
 0x1a1   : > { %v869_v34 = vadd.f32 %v737_v30, %v600_v28  ;;  %v1240_v35 = vpop.f32.mrb[13].mxu0  ;;  %v889_v36 = vadd.f32 %v817_v32, %v620_v29  ;;  %v1280_v37 = vpop.f32.mrb[13].mxu1  ;;  %v608_v28 = vld [vmem:[%s1982_s21 + $0x70] sm:$0xff] }
 0x1a2   : > { %v740_v38 = vpop.f32.mrb[14].mxu0  ;;  %v820_v40 = vpop.f32.mrb[14].mxu1  ;;  %v628_v29 = vld [vmem:[%s1982_s21 + $0x110] sm:$0xff] }
 0x1a3   : > { %906 = vst [vmem:[%s1982_s21 + $0x30] sm:$0xff] %v869_v34  ;;  %v870_v41 = vadd.f32 %v740_v38, %v601_v31  ;;  %v1241_v42 = vpop.f32.mrb[15].mxu0  ;;  %926 = vst [vmem:[%s1982_s21 + $0xd0] sm:$0xff] %v889_v36  ;;  %v890_v43 = vadd.f32 %v820_v40, %v621_v33  ;;  %v1281_v44 = vpop.f32.mrb[15].mxu1  ;;  %v609_v31 = vld [vmem:[%s1982_s21 + $0x78] sm:$0xff] }
 0x1a4   : > { %v629_v33 = vld [vmem:[%s1982_s21 + $0x118] sm:$0xff] }
 0x1a5   : > { %907 = vst [vmem:[%s1982_s21 + $0x38] sm:$0xff] %v870_v41  ;;  %927 = vst [vmem:[%s1982_s21 + $0xd8] sm:$0xff] %v890_v43 }
 0x1a8   : > { %v745_v47 = vpop.f32.mrb[16].mxu0  ;;  %v825_v49 = vpop.f32.mrb[16].mxu1 }
 0x1a9   : > { %v871_v51 = vadd.f32 %v745_v47, %v602_v45  ;;  %v1244_v39 = vpop.f32.mrb[17].mxu0  ;;  %v891_v52 = vadd.f32 %v825_v49, %v622_v46  ;;  %v1284_v53 = vpop.f32.mrb[17].mxu1  ;;  %v610_v45 = vld [vmem:[%s1982_s21 + $0x80] sm:$0xff] }
 0x1aa   : > { %v748_v54 = vpop.f32.mrb[18].mxu0  ;;  %v828_v55 = vpop.f32.mrb[18].mxu1  ;;  %v630_v46 = vld [vmem:[%s1982_s21 + $0x120] sm:$0xff] }
 0x1ab   : > { %908 = vst [vmem:[%s1982_s21 + $0x40] sm:$0xff] %v871_v51  ;;  %v872_v56 = vadd.f32 %v748_v54, %v603_v48  ;;  %v1245_v57 = vpop.f32.mrb[19].mxu0  ;;  %928 = vst [vmem:[%s1982_s21 + $0xe0] sm:$0xff] %v891_v52  ;;  %v892_v58 = vadd.f32 %v828_v55, %v623_v50  ;;  %v1285_v59 = vpop.f32.mrb[19].mxu1  ;;  %v611_v48 = vld [vmem:[%s1982_s21 + $0x88] sm:$0xff] }
 0x1ad   : > { %909 = vst [vmem:[%s1982_s21 + $0x48] sm:$0xff] %v872_v56  ;;  %929 = vst [vmem:[%s1982_s21 + $0xe8] sm:$0xff] %v892_v58  ;;  %v612_v58 = vld [vmem:[%s1982_s21 + $0x90] sm:$0xff] }
 0x1b0   : > { %v753_v62 = vpop.f32.mrb[20].mxu0  ;;  %v833_v0 = vpop.f32.mrb[20].mxu1 }
 0x1b1   : > { %v873_v2 = vadd.f32 %v753_v62, %v604_v60  ;;  %v1248_v3 = vpop.f32.mrb[21].mxu0  ;;  %v893_v4 = vadd.f32 %v833_v0, %v624_v61  ;;  %v1288_v5 = vpop.f32.mrb[21].mxu1  ;;  %v613_v60 = vld [vmem:[%s1982_s21 + $0x98] sm:$0xff] }
 0x1b2   : > { %v756_v6 = vpop.f32.mrb[22].mxu0  ;;  %v836_v7 = vpop.f32.mrb[22].mxu1 }
 0x1b3   : > { %910 = vst [vmem:[%s1982_s21 + $0x50] sm:$0xff] %v873_v2  ;;  %v874_v8 = vadd.f32 %v756_v6, %v605_v63  ;;  %v1249_v9 = vpop.f32.mrb[23].mxu0  ;;  %930 = vst [vmem:[%s1982_s21 + $0xf0] sm:$0xff] %v893_v4  ;;  %v894_v10 = vadd.f32 %v836_v7, %v625_v1  ;;  %v1289_v11 = vpop.f32.mrb[23].mxu1 }
 0x1b5   : > { %911 = vst [vmem:[%s1982_s21 + $0x58] sm:$0xff] %v874_v8  ;;  %931 = vst [vmem:[%s1982_s21 + $0xf8] sm:$0xff] %v894_v10 }
 0x1b8   : > { %v761_v14 = vpop.f32.mrb[24].mxu0  ;;  %v841_v16 = vpop.f32.mrb[24].mxu1 }
 0x1b9   : > { %v875_v18 = vadd.f32 %v761_v14, %v606_v12  ;;  %v1252_v19 = vpop.f32.mrb[25].mxu0  ;;  %v895_v20 = vadd.f32 %v841_v16, %v626_v13  ;;  %v1292_v21 = vpop.f32.mrb[25].mxu1 }
 0x1ba   : > { %v764_v22 = vpop.f32.mrb[26].mxu0  ;;  %v844_v23 = vpop.f32.mrb[26].mxu1 }
 0x1bb   : > { %912 = vst [vmem:[%s1982_s21 + $0x60] sm:$0xff] %v875_v18  ;;  %v876_v24 = vadd.f32 %v764_v22, %v607_v15  ;;  %v1253_v25 = vpop.f32.mrb[27].mxu0  ;;  %932 = vst [vmem:[%s1982_s21 + $0x100] sm:$0xff] %v895_v20  ;;  %v896_v26 = vadd.f32 %v844_v23, %v627_v17  ;;  %v1293_v27 = vpop.f32.mrb[27].mxu1 }
 0x1bd   : > { %913 = vst [vmem:[%s1982_s21 + $0x68] sm:$0xff] %v876_v24  ;;  %933 = vst [vmem:[%s1982_s21 + $0x108] sm:$0xff] %v896_v26 }
 0x1c0   : > { %v769_v30 = vpop.f32.mrb[28].mxu0  ;;  %v849_v32 = vpop.f32.mrb[28].mxu1 }
 0x1c1   : > { %v877_v34 = vadd.f32 %v769_v30, %v608_v28  ;;  %v1256_v35 = vpop.f32.mrb[29].mxu0  ;;  %v897_v36 = vadd.f32 %v849_v32, %v628_v29  ;;  %v1296_v37 = vpop.f32.mrb[29].mxu1 }
 0x1c2   : > { %v772_v38 = vpop.f32.mrb[30].mxu0  ;;  %v852_v40 = vpop.f32.mrb[30].mxu1 }
 0x1c3   : > { %914 = vst [vmem:[%s1982_s21 + $0x70] sm:$0xff] %v877_v34  ;;  %v878_v41 = vadd.f32 %v772_v38, %v609_v31  ;;  %v1257_v42 = vpop.f32.mrb[31].mxu0  ;;  %934 = vst [vmem:[%s1982_s21 + $0x110] sm:$0xff] %v897_v36  ;;  %v898_v43 = vadd.f32 %v852_v40, %v629_v33  ;;  %v1297_v44 = vpop.f32.mrb[31].mxu1 }
 0x1c5   : > { %915 = vst [vmem:[%s1982_s21 + $0x78] sm:$0xff] %v878_v41  ;;  %935 = vst [vmem:[%s1982_s21 + $0x118] sm:$0xff] %v898_v43 }
 0x1c8   : > { %v777_v47 = vpop.f32.mrb[32].mxu0  ;;  %v857_v49 = vpop.f32.mrb[32].mxu1 }
 0x1c9   : > { %v879_v50 = vadd.f32 %v777_v47, %v610_v45  ;;  %v1260_v51 = vpop.f32.mrb[33].mxu0  ;;  %v899_v39 = vadd.f32 %v857_v49, %v630_v46  ;;  %v1300_v52 = vpop.f32.mrb[33].mxu1 }
 0x1ca   : > { %v780_v53 = vpop.f32.mrb[34].mxu0  ;;  %v860_v54 = vpop.f32.mrb[34].mxu1 }
 0x1cb   : > { %916 = vst [vmem:[%s1982_s21 + $0x80] sm:$0xff] %v879_v50  ;;  %v880_v55 = vadd.f32 %v780_v53, %v611_v48  ;;  %v1261_v56 = vpop.f32.mrb[35].mxu0  ;;  %936 = vst [vmem:[%s1982_s21 + $0x120] sm:$0xff] %v899_v39  ;;  %v1301_v57 = vpop.f32.mrb[35].mxu1 }
 0x1cd   : > { %917 = vst [vmem:[%s1982_s21 + $0x88] sm:$0xff] %v880_v55 }
 0x1d0   : > { %v785_v59 = vpop.f32.mrb[36].mxu0 }
 0x1d1   : > { %v881_v61 = vadd.f32 %v785_v59, %v612_v58  ;;  %v1264_v62 = vpop.f32.mrb[37].mxu0 }
 0x1d2   : > { %v788_v63 = vpop.f32.mrb[38].mxu0 }
 0x1d3   : > { %918 = vst [vmem:[%s1982_s21 + $0x90] sm:$0xff] %v881_v61  ;;  %v882_v0 = vadd.f32 %v788_v63, %v613_v60  ;;  %v1265_v1 = vpop.f32.mrb[39].mxu0 }
 0x1d5   : > { %919 = vst [vmem:[%s1982_s21 + $0x98] sm:$0xff] %v882_v0 }
 0x1d6   : > { %1520 = shalt.err (!%p1517_p10)
}
 0x1d7   : > { %s1521_s27 = scalar_lea.hbm %s2247_s23, 4736  ;;  %s1525_s26 = scalar_lea.hbm %s2321_s2, 9472 }
 0x1d8   : > { %p1522_p12 = scmp.ne.s32.totalorder %s2247_s23, %s1521_s27  ;;  %p1526_p1 = scmp.lt.u32.totalorder %s2247_s23, %s2321_s2 }
 0x1d9   : > { %p1527_p2 = scmp.lt.u32.totalorder %s1525_s26, %s1521_s27  ;;  %p1529_p4 = scmp.lt.u32.totalorder %s1521_s27, %s2247_s23 }
 0x1da   : > { %p1523_p13 = pnand %p1522_p12, %p1804_p9 }
 0x1db   : > { %p1528_p3 = por %p1527_p2, %p1526_p1 }
 0x1dc   : > { %p1524_p0 = pneg %p1523_p13 }
 0x1dd   : > { %p1530_p5 = por %p1529_p4, %p1528_p3 }
 0x1df   : > { %p1531_p6 = pnand %p1530_p5, %p1524_p0 }
 0x1e1   : > { %1534 = shalt.err (!%p1531_p6)
}
 0x1e2   : > { %s1703_s7 = smov 128   ;;  %s1704_s6 = smov 8  }
 0x1e3   : > { %1322 = dma.vmem_to_hbm [thread:$0]  (%p1804_p9), %s2249_s22, 4736, %s2247_s23, %s2255_s16, %s1703_s7, %s1703_s7, %s1704_s6  }
 0x1e4 PF: > { %p1328_p7 = scmp.ge.s32.totalorder %s1665_s20, 2  ;;  %s966_s15 = sand.u32 1, %s1621_s9  }
 0x1e5   : > { %s967_s25 = scalar_lea.sflag [#allocation4], %s966_s15 }
 0x1e6   : > { %p1325_p8 = pnand %p1328_p7, %p1812_p11 }
 0x1e8   : > { %1616 = dma.done.wait (!%p1325_p8), %s967_s25, 4736  }
 0x1e9   : > { %1618 = vsyncadd (!%p1325_p8), %s967_s25, 4294962560  ;;  %s15_s20 = sadd.s32 1, %s1665_s20   ;;  %s2344_s14 = sld [smem:[#allocation10_spill]] }
 0x1ea   : > { %p12_p10 = scmp.ge.s32.totalorder %s15_s20, 10   ;;  %s2345_s28 = sld [smem:[#allocation11_spill]] }
 0x1eb   : > { %s2346_s16 = sld [smem:[#allocation6_spill]]  ;;  %s2347_s22 = sld [smem:[#allocation7_spill]] }
 0x1ec   : > { %s2348_s3 = sld [smem:[#allocation8_spill]]  ;;  %s2349_s19 = sld [smem:[#allocation9_spill]] }
 0x1ed   : > { %s2350_s9 = smov %s1625_s10  ;;  %s2351_s10 = smov %s1629_s11 }
 0x1ee   : > { %s2353_s12 = smov %s1637_s13  ;;  %s2356_s15 = smov %s1657_s18 }
 0x1ef   : > { %s2352_s11 = smov %s2344_s14  ;;  %s2355_s14 = smov %s1653_s17 }
 0x1f0   : > { %s2354_s13 = smov %s2345_s28  ;;  %14 = sbr.rel (!%p12_p10) target bundleno = 9 (0x9), region = 155 }
 0x1f1   : > { %s2357_s17 = smov %s2347_s22 }
 0x1f2   : > { %s2358_s18 = smov %s2348_s3 }
 0x1f7   :  { %972 = vsyncpa [#allocation4], 1 }
 0x1f8   :  { %974 = vsyncpa [#allocation4 + $0x1], 1 }

</bundles_post_ra>
